<compile_context>
chip_gen: v6e
topology: v6e:2x2x1
jax: 0.10.0
libtpu: 0.0.40
codegen_flags: <defaults>
</compile_context>

<pallas_src>
import numpy as np
import jax
import jax.numpy as jnp
from jax.experimental import pallas as pl
from jax.experimental.pallas import tpu as pltpu

EPS = 1e-6


def _gem_kernel(p_ref, x_ref, s_ref, o_ref):
    # p_ref: SMEM (1,)
    # x_ref: VMEM (1, TILE_C, HW)         -- hw lane-dense
    # s_ref: VMEM (HW, TOTAL_BINS)        -- pooling matrix (1/k_b block entries)
    # o_ref: VMEM (1, TILE_C, TOTAL_BINS)
    p = p_ref[0]
    inv_p = 1.0 / p                               # hoisted scalar, off hot path

    x = x_ref[0].astype(jnp.float32)              # [TILE_C, HW]
    x = jnp.maximum(x, EPS)                       # clamp(min=eps)
    zp = jnp.exp(p * jnp.log(x))                  # x ** p   (x > 0 guaranteed)

    # Segmented mean over hw for every bin in one MXU pass, f32 accumulation.
    pooled = jnp.dot(zp, s_ref[...], preferred_element_type=jnp.float32)

    # Epilogue on the small [TILE_C, TOTAL_BINS] result only: m ** (1/p).
    o_ref[0] = jnp.exp(inv_p * jnp.log(pooled)).astype(o_ref.dtype)


def _build_pool_matrix(hw, bin_num):
    """S[hw, sum(bins)]: column block for bin b has entries 1/k_b on its segment."""
    cols = []
    for b in bin_num:
        assert hw % b == 0, f"bin {b} must divide h*w={hw}"
        k = hw // b
        m = np.zeros((hw, b), dtype=np.float32)
        m[np.arange(hw), np.arange(hw) // k] = 1.0 / k
        cols.append(m)
    return jnp.asarray(np.concatenate(cols, axis=1))


def _choose_tile_c(c, hw, budget_bytes=4 * 1024 * 1024):
    """Largest channel tile (multiple of 8 dividing c, or c itself) whose f32
    input buffer stays under `budget_bytes` (double-buffered => <= 2x budget,
    safe even for v7x's smaller VMEM)."""
    max_tile = max(8, budget_bytes // (hw * 4))
    if c <= max_tile:
        return c
    t = (max_tile // 8) * 8
    while t >= 8:
        if c % t == 0:
            return t
        t -= 8
    return c  # fallback: whole channel axis (full-dim block is always legal)


def gem_hpp(x, p_scalar, bin_num=(64,)):
    """x: [n, c, h, w] -> [n, c, sum(bin_num)]   (GeMHPP forward)."""
    n, c, h, w = x.shape
    hw = h * w
    total_bins = int(sum(bin_num))
    for b in bin_num:
        assert hw % b == 0, f"bin {b} must divide h*w={hw}"

    x_flat = x.reshape(n, c, hw)                 # keep hw lane-dense
    pool_mat = _build_pool_matrix(hw, bin_num)   # [hw, total_bins]
    tile_c = _choose_tile_c(c, hw)

    return pl.pallas_call(
        _gem_kernel,
        out_shape=jax.ShapeDtypeStruct((n, c, total_bins), x.dtype),
        grid=(n, pl.cdiv(c, tile_c)),
        in_specs=[
            pl.BlockSpec(memory_space=pltpu.MemorySpace.SMEM),          # p scalar
            pl.BlockSpec((1, tile_c, hw), lambda i, j: (i, j, 0)),      # x tile
            pl.BlockSpec((hw, total_bins), lambda i, j: (0, 0)),        # pooling matrix
        ],
        out_specs=pl.BlockSpec((1, tile_c, total_bins), lambda i, j: (i, j, 0)),
        compiler_params=pltpu.CompilerParams(
            dimension_semantics=("parallel", "parallel")),
    )(p_scalar, x_flat, pool_mat)


def gem_hpp_ref(x, p, bin_num=(64,)):
    """Pure-JAX reference mirroring the PyTorch forward."""
    n, c, h, w = x.shape
    feats = []
    for b in bin_num:
        z = x.reshape(n, c, b, -1).astype(jnp.float32)
        z = jnp.maximum(z, EPS)
        z = jnp.mean(z ** p, axis=-1)
        feats.append(z ** (1.0 / p))
    return jnp.concatenate(feats, axis=-1)


if __name__ == "__main__":
    key = jax.random.PRNGKey(0)
    n, c, h, w = 2, 4, 16, 16
    bin_num = (64,)

    x = jax.random.uniform(key, (n, c, h, w), dtype=jnp.float32)

    # nn.Parameter(torch.ones(1) * 6.5), initialized deterministically in-script.
    p_param = jnp.ones((1,), dtype=jnp.float32) * 6.5

    out = gem_hpp(x, p_param, bin_num)
    out = jax.block_until_ready(out)

    ref = gem_hpp_ref(x, float(p_param[0]), bin_num)
    assert out.shape == (n, c, sum(bin_num)), out.shape
    np.testing.assert_allclose(np.asarray(out), np.asarray(ref), rtol=1e-4, atol=1e-5)

    print("KERNEL_OK")
</pallas_src>

<mosaic_0001>
module attributes {stable_mosaic.version = 11 : i64} {
  func.func @_gem_kernel(%arg0: i32, %arg1: i32, %arg2: memref<1xf32, #tpu.memory_space<smem>>, %arg3: memref<1x4x256xf32, #tpu.memory_space<vmem>>, %arg4: memref<256x64xf32, #tpu.memory_space<vmem>>, %arg5: memref<1x4x64xf32, #tpu.memory_space<vmem>>) attributes {dimension_semantics = [#tpu.dimension_semantics<parallel>, #tpu.dimension_semantics<parallel>], iteration_bounds = array<i64: 2, 1>, scalar_prefetch = 0 : i64, scratch_operands = 0 : i64, tpu.core_type = #tpu.core_type<tc>, window_params = [{transform_indices = @transform_0, window_bounds = array<i64: 1>}, {transform_indices = @transform_1, window_bounds = array<i64: 1, 4, 256>}, {pipeline_mode = #tpu.pipeline_mode<synchronous>, transform_indices = @transform_2, window_bounds = array<i64: 256, 64>}, {transform_indices = @transform_3, window_bounds = array<i64: 1, 4, 64>}]} {
    %c0 = arith.constant 0 : index
    %0 = memref.load %arg2[%c0] : memref<1xf32, #tpu.memory_space<smem>>
    %cst = arith.constant 1.000000e+00 : f32
    %1 = arith.divf %cst, %0 : f32
    %c0_0 = arith.constant 0 : index
    %c0_1 = arith.constant 0 : index
    %c0_2 = arith.constant 0 : index
    %2 = vector.load %arg3[%c0_0, %c0_1, %c0_2] : memref<1x4x256xf32, #tpu.memory_space<vmem>>, vector<1x4x256xf32>
    %3 = vector.shape_cast %2 : vector<1x4x256xf32> to vector<4x256xf32>
    %cst_3 = arith.constant 9.99999997E-7 : f32
    %4 = vector.broadcast %cst_3 : f32 to vector<4x256xf32>
    %5 = arith.maximumf %3, %4 : vector<4x256xf32>
    %6 = math.log %5 : vector<4x256xf32>
    %7 = vector.broadcast %0 : f32 to vector<4x256xf32>
    %8 = arith.mulf %7, %6 : vector<4x256xf32>
    %9 = math.exp %8 : vector<4x256xf32>
    %c0_4 = arith.constant 0 : index
    %c0_5 = arith.constant 0 : index
    %10 = vector.load %arg4[%c0_4, %c0_5] : memref<256x64xf32, #tpu.memory_space<vmem>>, vector<256x64xf32>
    %cst_6 = arith.constant dense<0.000000e+00> : vector<4x64xf32>
    %11 = tpu.matmul %9, %10, %cst_6 {dimension_numbers = #tpu.dot_dimension_numbers<[1], [0], [0], [1], [0, 0, 1, 1], [], []>} : vector<4x256xf32>, vector<256x64xf32>, vector<4x64xf32> -> vector<4x64xf32>
    %12 = math.log %11 : vector<4x64xf32>
    %13 = vector.broadcast %1 : f32 to vector<4x64xf32>
    %14 = arith.mulf %13, %12 : vector<4x64xf32>
    %15 = math.exp %14 : vector<4x64xf32>
    %c0_7 = arith.constant 0 : index
    %c0_8 = arith.constant 0 : index
    %c0_9 = arith.constant 0 : index
    %16 = vector.load %arg5[%c0_7, %c0_8, %c0_9] : memref<1x4x64xf32, #tpu.memory_space<vmem>>, vector<1x4x64xf32>
    %17 = vector.shape_cast %16 : vector<1x4x64xf32> to vector<4x64xf32>
    %18 = vector.shape_cast %15 : vector<4x64xf32> to vector<1x4x64xf32>
    tpu.vector_store %arg5[%c0_7, %c0_8, %c0_9], %18 {strides = array<i32>} : memref<1x4x64xf32, #tpu.memory_space<vmem>>, vector<1x4x64xf32>,
    return
  }
  func.func @transform_0(%arg0: i32, %arg1: i32) -> i32 {
    %c0_i32 = arith.constant 0 : i32
    %c0_i32_0 = arith.constant 0 : i32
    return %c0_i32 : i32
  }
  func.func @transform_1(%arg0: i32, %arg1: i32) -> (i32, i32, i32) {
    %c0_i32 = arith.constant 0 : i32
    %c0_i32_0 = arith.constant 0 : i32
    return %arg0, %arg1, %c0_i32 : i32, i32, i32
  }
  func.func @transform_2(%arg0: i32, %arg1: i32) -> (i32, i32) {
    %c0_i32 = arith.constant 0 : i32
    %c0_i32_0 = arith.constant 0 : i32
    %c0_i32_1 = arith.constant 0 : i32
    return %c0_i32, %c0_i32_0 : i32, i32
  }
  func.func @transform_3(%arg0: i32, %arg1: i32) -> (i32, i32, i32) {
    %c0_i32 = arith.constant 0 : i32
    %c0_i32_0 = arith.constant 0 : i32
    return %arg0, %arg1, %c0_i32 : i32, i32, i32
  }
}

</mosaic_0001>

<bundles_post_ra>
// kernel: tpu_custom_call.1
= control target key start
LH: loop header
LB: loop body
LE: loop exit
PB: predicated region body
PF: predicated region fallthrough
CT: control target
= control target key end

     0   :  { %s836_s0 = inlined_call_operand.<no memory space> [shape: f32[1], index: 0, kind: input, shape index: {}]   ;;  %s837_s1 = inlined_call_operand.vmem [shape: f32[2,4,256], index: 1, kind: input, shape index: {}]   ;;  %s838_s2 = inlined_call_operand.vmem [shape: f32[256,64], index: 2, kind: input, shape index: {}]   ;;  %s839_s3 = inlined_call_operand.hbm [shape: f32[2,4,64], index: 3, kind: output, shape index: {}]  }
   0x1   :  { %8 = sst [smem:[#allocation2]] %s836_s0 }
   0x2   :  { %9 = vsyncpa [#allocation4], 0 }
   0x3   :  { %11 = vsyncpa [#allocation4 + $0x1], 0  ;;  %s632_s14 = smov 0   ;;  %s634_s15 = smov 0  }
   0x4   :  { %s636_s16 = smov 0   ;;  %s638_s17 = smov 0  }
   0x5   :  { %s640_s18 = smov 0   ;;  %s642_s19 = smov 0  }
   0x6 LB: > { %s415_s0 = sadd.s32 4294967295, %s606_s19   ;;  %s416_s20 = sadd.s32 4294967294, %s606_s19   ;;  %s606_s19 = sphi %s642_s19, %s17_s19   ;;  %s602_s18 = sphi %s640_s18, %s846_s18   ;;  %s598_s17 = sphi %s638_s17, %s845_s17   ;;  %s594_s16 = sphi %s636_s16, %s844_s16   ;;  %s590_s15 = sphi %s634_s15, %s843_s15   ;;  %s586_s14 = sphi %s632_s14, %s842_s14  }
   0x7   : > { %s29_s21 = sadd.s32 1, %s602_s18  ;;  %s108_s22 = sadd.s32 1, %s594_s16 }
   0x8   : > { %p31_p0 = scmp.ge.s32.totalorder %s29_s21, 2  ;;  %p118_p1 = scmp.ne.s32.totalorder %s594_s16, %s590_s15 }
   0x9   : > { %p119_p2 = scmp.eq.s32.totalorder %s415_s0, 1  ;;  %p124_p3 = scmp.ne.s32.totalorder %s590_s15, %s586_s14 }
   0xa   : > { %s848_s21 = smov (%p31_p0, %s29_s21), 0  ;;  %p125_p5 = scmp.eq.s32.totalorder %s416_s20, 1 }
   0xb   : > { %p672_p4 = por %p119_p2, %p118_p1  ;;  %s103_s24 = ssub.s32 %s602_s18, %s848_s21 }
   0xc   : > { %p419_p6 = scmp.ge.s32.totalorder %s606_s19, 1  ;;  %p106_p7 = scmp.eq.s32.totalorder %s103_s24, 0 }
   0xd   : > { %p679_p8 = por %p125_p5, %p124_p3  ;;  %p161_p9 = scmp.lt.s32.totalorder %s606_s19, 3 }
   0xe   : > { %s685_s26 = scalar_select %p106_p7, %s594_s16, %s108_s22  }
   0xf   : > { %p162_p10 = pnand %p419_p6, %p161_p9 }
  0x10   : > { %p189_p11 = scmp.lt.s32.totalorder (!%p162_p10), %s598_s17, 1  ;;  %s697_s6 = sld [smem:[#allocation2]] (!%p162_p10) }
  0x11   : > { %165 = sbr.rel (%p162_p10) target bundleno = 310 (0x136), region = 32  ;;  %s186_s24 = sand.u32 (!%p162_p10), 1, %s590_s15  }
  0x12   : > { %s420_s27 = sshll.u32 (!%p162_p10), %s186_s24, 2  ;;  %s424_s28 = sshll.u32 (!%p162_p10), %s598_s17, 6 }
  0x13   : > { %s188_s29 = scalar_lea.vmem (!%p162_p10), [#allocation3], %s420_s27  ;;  %s796_s7 = scalar_lea.hbm (!%p162_p10), %s839_s3, %s424_s28 }
  0x14   : > { %s338_s30 = sshll.u32 (!%p162_p10), %s188_s29, 4  ;;  %s608_s10 = smov (!%p162_p10), [#allocation3]   ;;  %s339_s30 = int_to_ptr.vmem [resolvable:$true] %s338_s30 }
  0x15   : > { %s530_s9 = scalar_lea.vmem (!%p162_p10), %s339_s30, 64 }
  0x16   : > { %v241_v0 = vld [vmem:[%s838_s2 + $0xf8] sm:$0xff]  ;;  %v240_v2 = vld [vmem:[%s838_s2 + $0xf0] sm:$0xff]  ;;  %v239_v4 = vld [vmem:[%s838_s2 + $0xe8] sm:$0xff]  ;;  %s190_s11 = scalar_select %p189_p11, %s598_s17, 1  ;;  %v199_v9 = vstv %s697_s6  ;;  %vm321_vm0 = vcmask 519168  }
  0x17   : > { %v225_v1 = vld [vmem:[%s838_s2 + $0x78] sm:$0xff]  ;;  %428 = vmatprep.subr.mxu0 %v241_v0  ;;  %v224_v3 = vld [vmem:[%s838_s2 + $0x70] sm:$0xff]  ;;  %v223_v5 = vld [vmem:[%s838_s2 + $0x68] sm:$0xff]  ;;  %520 = vrcp.f32 %v199_v9  ;;  %p531_p12 = scmp.ne.s32.totalorder %s339_s30, %s530_s9 }
  0x18   : > { %429 = vmatpush3.msra.mxu0 %v225_v1  ;;  %v238_v6 = vld [vmem:[%s838_s2 + $0xe0] sm:$0xff]  ;;  %s427_s22 = sshll.u32 %s190_s11, 3  ;;  %v237_v8 = vld [vmem:[%s838_s2 + $0xd8] sm:$0xff]  ;;  %v236_v11 = vld [vmem:[%s838_s2 + $0xd0] sm:$0xff]  ;;  %s534_s11 = sshll.u32 %s608_s10, 4  ;;  %s535_s11 = int_to_ptr.vmem [resolvable:$false] %s534_s11 }
  0x19   : > { %430 = vmatprep.subr.mxu0 %v240_v2  ;;  %v222_v7 = vld [vmem:[%s838_s2 + $0x60] sm:$0xff]  ;;  %v221_v10 = vld [vmem:[%s838_s2 + $0x58] sm:$0xff]  ;;  %s197_s8 = scalar_lea.vmem %s837_s1, %s427_s22  ;;  %v220_v12 = vld [vmem:[%s838_s2 + $0x50] sm:$0xff]  ;;  %p532_p13 = pnand %p531_p12, %p672_p4 }
  0x1a   : > { %431 = vmatpush3.msra.mxu0 %v224_v3  ;;  %v235_v13 = vld [vmem:[%s838_s2 + $0xc8] sm:$0xff]  ;;  %v202_v14 = vld [vmem:[%s197_s8] sm:$0xff]  ;;  %v233_v19 = vld [vmem:[%s838_s2 + $0xb8] sm:$0xff]  ;;  %s324_s8 = scalar_lea.sflag [#allocation4], %s186_s24  ;;  %s536_s17 = scalar_lea.vmem %s535_s11, 128 }
  0x1b   : > { %432 = vmatprep.subr.mxu0 %v239_v4  ;;  %v219_v15 = vld [vmem:[%s838_s2 + $0x48] sm:$0xff]  ;;  %v203_v16 = vmax.f32 %v202_v14, 1e-06  ;;  %v234_v17 = vld [vmem:[%s838_s2 + $0xc0] sm:$0xff]  ;;  %v217_v20 = vld [vmem:[%s838_s2 + $0x38] sm:$0xff]  ;;  %p533_p0 = pneg %p532_p13  ;;  %p537_p1 = scmp.lt.s32.totalorder %s339_s30, %s535_s11 }
  0x1c   : > { %433 = vmatpush3.msra.mxu0 %v223_v5  ;;  %v218_v18 = vld [vmem:[%s838_s2 + $0x40] sm:$0xff]  ;;  %v232_v21 = vld [vmem:[%s838_s2 + $0xb0] sm:$0xff]  ;;  %v231_v23 = vld [vmem:[%s838_s2 + $0xa8] sm:$0xff]  ;;  %p538_p2 = scmp.lt.s32.totalorder %s536_s17, %s530_s9 }
  0x1d   : > { %434 = vmatprep.subr.mxu0 %v238_v6  ;;  %522 = vlog2.f32 %v203_v16  ;;  %v216_v22 = vld [vmem:[%s838_s2 + $0x30] sm:$0xff]  ;;  %v215_v24 = vld [vmem:[%s838_s2 + $0x28] sm:$0xff]  ;;  %v230_v26 = vld [vmem:[%s838_s2 + $0xa0] sm:$0xff] }
  0x1e   : > { %435 = vmatpush3.msra.mxu0 %v222_v7  ;;  %v214_v27 = vld [vmem:[%s838_s2 + $0x20] sm:$0xff]  ;;  %v229_v28 = vld [vmem:[%s838_s2 + $0x98] sm:$0xff]  ;;  %v228_v30 = vld [vmem:[%s838_s2 + $0x90] sm:$0xff]  ;;  %p539_p3 = por %p538_p2, %p537_p1 }
  0x1f   : > { %436 = vmatprep.subr.mxu0 %v237_v8  ;;  %v213_v29 = vld [vmem:[%s838_s2 + $0x18] sm:$0xff]  ;;  %v212_v31 = vld [vmem:[%s838_s2 + $0x10] sm:$0xff]  ;;  %v227_v33 = vld [vmem:[%s838_s2 + $0x88] sm:$0xff] }
  0x20   : > { %437 = vmatpush3.msra.mxu0 %v221_v10  ;;  %v211_v34 = vld [vmem:[%s838_s2 + $0x8] sm:$0xff]  ;;  %v226_v36 = vld [vmem:[%s838_s2 + $0x80] sm:$0xff]  ;;  %p540_p5 = pnand %p539_p3, %p533_p0 }
  0x21   : > { %438 = vmatprep.subr.mxu0 %v236_v11  ;;  %v210_v37 = vld [vmem:[%s838_s2] sm:$0xff] }
  0x22   : > { %439 = vmatpush3.msra.mxu0 %v220_v12 }
  0x23   : > { %440 = vmatprep.subr.mxu0 %v235_v13 }
  0x24   : > { %441 = vmatpush3.msra.mxu0 %v219_v15  ;;  %v521_v25 = vpop.eup %520 }
  0x25   : > { %442 = vmatprep.subr.mxu0 %v234_v17  ;;  %463 = vpush %v521_v25 }
  0x26   : > { %443 = vmatpush3.msra.mxu0 %v218_v18 }
  0x27   : > { %444 = vmatprep.subr.mxu0 %v233_v19 }
  0x28   : > { %445 = vmatpush3.msra.mxu0 %v217_v20 }
  0x29   : > { %446 = vmatprep.subr.mxu0 %v232_v21 }
  0x2a   : > { %447 = vmatpush3.msra.mxu0 %v216_v22  ;;  %v523_v32 = vpop.eup %522 }
  0x2b   : > { %448 = vmatprep.subr.mxu0 %v231_v23  ;;  %v205_v35 = vmul.f32 0.6931472, %v523_v32 }
  0x2c   : > { %449 = vmatpush3.msra.mxu0 %v215_v24 }
  0x2d   : > { %450 = vmatprep.subr.mxu0 %v230_v26  ;;  %v207_v38 = vmul.f32 %v205_v35, %v199_v9 }
  0x2e   : > { %451 = vmatpush3.msra.mxu0 %v214_v27 }
  0x2f   : > { %452 = vmatprep.subr.mxu0 %v229_v28  ;;  %v208_v39 = vmul.f32 1.442695, %v207_v38 }
  0x30   : > { %453 = vmatpush3.msra.mxu0 %v213_v29 }
  0x31   : > { %454 = vmatprep.subr.mxu0 %v228_v30  ;;  %524 = vpow2.f32 %v208_v39 }
  0x32   : > { %455 = vmatpush3.msra.mxu0 %v212_v31 }
  0x33   : > { %456 = vmatprep.subr.mxu0 %v227_v33 }
  0x34   : > { %457 = vmatpush3.msra.mxu0 %v211_v34 }
  0x35   : > { %458 = vmatprep.subr.mxu0 %v226_v36 }
  0x36   : > { %459 = vmatpush3.msra.mxu0 %v210_v37 }
  0x3e   : > { %v525_v40 = vpop.eup %524 }
  0x3f   : > { %v243_v41 = vcombine.high %v525_v40, %v525_v40 }
  0x41   : > { %309 = vmatprep.mubr.f32.mxu0 %v243_v41 }
  0x42   : > { %310 = vmatmul.mubr.f32.vlgmr.msra.gmra.mxu0 %v525_v40 }
  0x56   : > { %s464_s22 = spop %463 }
  0x57   : > { %v317_v46 = vstv %s464_s22 }
 0x102   : > { %v460_v42 = vpop.f32.mrf.mxu0 }
 0x104   : > { %v461_v43 = vpop.f32.mrf.mxu0 }
 0x105   : > { %v462_v44 = vadd.f32 %v461_v43, %v460_v42 }
 0x107   : > { %526 = vlog2.f32 %v462_v44 }
 0x114   : > { %v527_v45 = vpop.eup %526 }
 0x115   : > { %v316_v47 = vmul.f32 0.6931472, %v527_v45 }
 0x117   : > { %v318_v48 = vmul.f32 %v317_v46, %v316_v47 }
 0x119   : > { %v319_v49 = vmul.f32 1.442695, %v318_v48 }
 0x11b   : > { %528 = vpow2.f32 %v319_v49 }
 0x128   : > { %v529_v50 = vpop.eup %528 }
 0x129   : > { %322 = vst.msk [vmem:[%s188_s29] sm:$0xf] %vm321_vm0, %v529_v50 }
 0x12a   : > { %543 = shalt.err (!%p540_p5)
}
 0x12b   : > { %s544_s12 = scalar_lea.hbm %s796_s7, 64  ;;  %s548_s0 = scalar_lea.hbm %s839_s3, 128 }
 0x12c   : > { %p545_p6 = scmp.ne.s32.totalorder %s796_s7, %s544_s12  ;;  %p549_p10 = scmp.lt.s32.totalorder %s796_s7, %s839_s3 }
 0x12d   : > { %p550_p11 = scmp.lt.s32.totalorder %s548_s0, %s544_s12 }
 0x12e   : > { %p546_p7 = pnand %p545_p6, %p672_p4 }
 0x12f   : > { %p551_p12 = por %p550_p11, %p549_p10 }
 0x130   : > { %p547_p9 = pneg %p546_p7 }
 0x132   : > { %p552_p13 = pnand %p551_p12, %p547_p9 }
 0x134   : > { %555 = shalt.err (!%p552_p13)
}
 0x135   : > { %465 = dma.vmem_to_hbm [thread:$0]  (%p672_p4), %s339_s30, 64, %s796_s7, %s324_s8  }
 0x136 PF: > { %p471_p0 = scmp.ge.s32.totalorder %s606_s19, 2  ;;  %s350_s24 = sand.u32 1, %s586_s14  }
 0x137   : > { %s351_s27 = scalar_lea.sflag [#allocation4], %s350_s24 }
 0x138   : > { %p468_p1 = pnand %p471_p0, %p679_p8 }
 0x13a   : > { %p469_p2 = pneg %p468_p1 }
 0x13c   : > { %581 = dma.done.wait (%p469_p2), %s351_s27, 64  }
 0x13d   : > { %583 = vsyncadd (%p469_p2), %s351_s27, 4294967232  ;;  %s17_s19 = sadd.s32 1, %s606_s19   ;;  %s842_s14 = smov %s590_s15 }
 0x13e   : > { %p14_p3 = scmp.ge.s32.totalorder %s17_s19, 4   ;;  %s843_s15 = smov %s594_s16 }
 0x13f   : > { %s844_s16 = smov %s685_s26  ;;  %s845_s17 = smov %s602_s18 }
 0x140   : > { %s846_s18 = smov %s848_s21  ;;  %16 = sbr.rel (!%p14_p3) target bundleno = 6 (0x6), region = 67 }
 0x145   :  { %356 = vsyncpa [#allocation4], 1 }
 0x146   :  { %358 = vsyncpa [#allocation4 + $0x1], 1 }

</bundles_post_ra>
